<compile_context>
chip_gen: v7x
topology: tpu7x:2x2x1
jax: 0.10.0
libtpu: 0.0.40
codegen_flags: <defaults>
</compile_context>

<pallas_src>
import jax
import jax.numpy as jnp
from jax.experimental import pallas as pl
from jax.experimental.pallas import tpu as pltpu


# ------------------------------ kernels ------------------------------------


def _rescale_kernel_3d(w_ref, x_ref, o_ref):
    # w_ref: (tile_c, 1) per-channel weights; x/o: (tile_n, tile_c, tile_l).
    # VPU broadcast over the batch and lane dims in one pass.
    o_ref[...] = x_ref[...] * w_ref[...][None, :, :]


def _rescale_kernel_2d(w_ref, x_ref, o_ref):
    # w_ref: (1, tile_l) element-expanded weights; x/o: (tile_n, tile_l).
    o_ref[...] = x_ref[...] * w_ref[...]


# --------------------------- tiling heuristics ------------------------------

_MIN_GRID_STEPS = 8           # keep enough steps for megacore / pipelining
_MIN_BLOCK_BYTES = 512 << 10  # ...but never shrink blocks below ~512 KiB
_TILE_C_CAP = 1024            # bound the lane-padded (tile_c, 1) weight block


def _hw_config():
    """Return (block_target_bytes, vmem_limit_bytes or None), generation-aware."""
    gen = None
    try:
        kind = jax.devices()[0].device_kind.lower()
        if "v7" in kind or "7x" in kind:
            gen = 7
        elif "v6" in kind:
            gen = 6
        elif "v5" in kind:
            gen = 5
    except Exception:
        gen = None
    try:
        # 64 MiB physical VMEM is a v7x-class signature regardless of naming.
        vmem = pltpu.get_tpu_info().vmem_capacity_bytes
        if vmem is not None and vmem <= (64 << 20):
            gen = 7
    except Exception:
        pass

    if gen is not None and gen >= 7:
        # v7x: fat 8 MiB blocks; 8 MiB x 2 arrays x 2 buffers (+ weight) needs
        # more than the 32 MiB default scope -> raise to 48 MiB (64 MiB phys).
        return 8 << 20, 48 << 20
    if gen == 6:
        # v6e: 4 MiB blocks (16 MiB with in+out double buffering) fit the
        # 32 MiB default scoped VMEM with no flag change.
        return 4 << 20, None
    # v5e / unknown: 2 MiB blocks -> ~8 MiB buffered, safely under the 16 MiB
    # default scope; per-step overhead already hidden at ~820 GB/s.
    return 2 << 20, None


def _sublane(itemsize):
    return {4: 8, 2: 16, 1: 32}.get(itemsize, 8)


def _choose_tiles_3d(n, c, l, itemsize, target_bytes):
    """Tiles for the (N, C, H*W) view. Requires l % 128 == 0 (lane-dense)."""
    target_elems = max(1, target_bytes // itemsize)
    sublane = _sublane(itemsize)

    # Lane dim: full H*W if it fits the budget, else a multiple of 128.
    if l <= target_elems:
        tile_l = l
    else:
        tile_l = max(128, min(l, (target_elems // 128) * 128))

    # Channel (sublane) dim: full C, or a multiple of the dtype's sublane
    # packing, capped so the lane-padded weight block stays small.
    budget_c = max(1, target_elems // tile_l)
    if c <= min(budget_c, _TILE_C_CAP) or c <= sublane:
        tile_c = min(c, _TILE_C_CAP) if c > _TILE_C_CAP else c
        if tile_c != c:  # c > cap but tiny budget path can't hit this; be safe
            tile_c = max(sublane, (_TILE_C_CAP // sublane) * sublane)
    else:
        tile_c = max(sublane, (min(budget_c, _TILE_C_CAP) // sublane) * sublane)

    # Batch dim (no layout constraint): pack batches when a full (C, H*W) slab
    # is still well under budget -> fewer, fatter grid steps.
    if tile_c == c and tile_l == l:
        tile_n = max(1, min(n, target_elems // max(1, tile_c * tile_l)))
    else:
        tile_n = 1

    # Keep >= ~8 grid steps for megacore sharding / pipeline overlap (v7x has
    # two TensorCores) as long as blocks stay >= ~512 KiB.
    min_block_elems = max(1, _MIN_BLOCK_BYTES // itemsize)

    def steps(tn):
        return pl.cdiv(n, tn) * pl.cdiv(c, tile_c) * pl.cdiv(l, tile_l)

    while (tile_n > 1 and steps(tile_n) < _MIN_GRID_STEPS
           and (tile_n // 2) * tile_c * tile_l >= min_block_elems):
        tile_n //= 2

    return tile_n, tile_c, tile_l


def _choose_tiles_2d(n, flat, itemsize, target_bytes):
    """Tiles for the (N, C*H*W) fallback view."""
    target_elems = max(1, target_bytes // itemsize)
    sublane = _sublane(itemsize)

    if flat <= target_elems:
        tile_l = flat
    else:
        tile_l = max(128, min(flat, (target_elems // 128) * 128))

    budget_n = max(1, target_elems // tile_l)
    if n <= budget_n or n <= sublane:
        tile_n = n
    else:
        tile_n = max(sublane, (budget_n // sublane) * sublane)

    # Relax batch packing to keep grid steps for megacore / pipelining.
    min_block_elems = max(1, _MIN_BLOCK_BYTES // itemsize)
    while True:
        s = pl.cdiv(n, tile_n) * pl.cdiv(flat, tile_l)
        if s >= _MIN_GRID_STEPS or tile_n <= sublane:
            break
        cand = max(sublane, ((tile_n // 2) // sublane) * sublane)
        if cand >= tile_n or cand * tile_l < min_block_elems:
            break
        tile_n = cand

    return tile_n, tile_l


def _compiler_params(dims, vmem_limit):
    kwargs = dict(dimension_semantics=dims)
    if vmem_limit is not None:
        kwargs["vmem_limit_bytes"] = vmem_limit
    return pltpu.CompilerParams(**kwargs)


# ------------------------------- wrapper ------------------------------------


def rescale(x, weight):
    """x: (N, C, H, W); weight: (C, 1, 1) or (C,). Returns weight * x (per channel)."""
    n, c, h, w = x.shape
    l = h * w
    itemsize = jnp.dtype(x.dtype).itemsize
    target_bytes, vmem_limit = _hw_config()

    w_c = jnp.reshape(weight, (c,)).astype(x.dtype)

    if l >= 128 and l % 128 == 0:
        # --- primary 3D path: lane-dense (N, C, H*W) view -------------------
        x3 = x.reshape(n, c, l)                    # free view of contiguous NCHW
        w2 = w_c.reshape(c, 1)
        tile_n, tile_c, tile_l = _choose_tiles_3d(n, c, l, itemsize, target_bytes)
        grid = (pl.cdiv(n, tile_n), pl.cdiv(c, tile_c), pl.cdiv(l, tile_l))

        out3 = pl.pallas_call(
            _rescale_kernel_3d,
            out_shape=jax.ShapeDtypeStruct((n, c, l), x.dtype),
            grid=grid,
            in_specs=[
                pl.BlockSpec((tile_c, 1), lambda ni, ci, li: (ci, 0)),
                pl.BlockSpec((tile_n, tile_c, tile_l),
                             lambda ni, ci, li: (ni, ci, li)),
            ],
            out_specs=pl.BlockSpec((tile_n, tile_c, tile_l),
                                   lambda ni, ci, li: (ni, ci, li)),
            compiler_params=_compiler_params(
                # Purely elementwise: every grid axis is independent.
                ("parallel", "parallel", "parallel"), vmem_limit),
            cost_estimate=pl.CostEstimate(
                flops=n * c * l,
                transcendentals=0,
                bytes_accessed=2 * n * c * l * itemsize + c * itemsize,
            ),
        )(w2, x3)
        return out3.reshape(n, c, h, w)

    # --- fallback 2D path: small / ragged H*W -------------------------------
    # Flatten to (N, C*H*W) and expand the weight once to a per-element row so
    # the kernel's last dim is as lane-dense as possible (no per-row masked
    # partial stores when H*W < 128 or H*W % 128 != 0).
    flat = c * l
    x2 = x.reshape(n, flat)
    w_row = jnp.repeat(w_c, l).reshape(1, flat)    # tiny: C*H*W elements
    tile_n, tile_l = _choose_tiles_2d(n, flat, itemsize, target_bytes)
    grid = (pl.cdiv(n, tile_n), pl.cdiv(flat, tile_l))

    out2 = pl.pallas_call(
        _rescale_kernel_2d,
        out_shape=jax.ShapeDtypeStruct((n, flat), x.dtype),
        grid=grid,
        in_specs=[
            pl.BlockSpec((1, tile_l), lambda ni, li: (0, li)),
            pl.BlockSpec((tile_n, tile_l), lambda ni, li: (ni, li)),
        ],
        out_specs=pl.BlockSpec((tile_n, tile_l), lambda ni, li: (ni, li)),
        compiler_params=_compiler_params(("parallel", "parallel"), vmem_limit),
        cost_estimate=pl.CostEstimate(
            flops=n * flat,
            transcendentals=0,
            bytes_accessed=2 * n * flat * itemsize + flat * itemsize,
        ),
    )(w_row, x2)
    return out2.reshape(n, c, h, w)


# -------------------------------- test --------------------------------------

if __name__ == "__main__":
    key = jax.random.PRNGKey(0)
    kx, kw, kx2 = jax.random.split(key, 3)

    # Primary (lane-dense H*W) path: N=2, C=4, H=W=16 -> H*W=256.
    N, C, H, W = 2, 4, 16, 16
    x = jax.random.normal(kx, (N, C, H, W), dtype=jnp.float32)
    # Parameter shape matches nn.Parameter(torch.ones(num_channels, 1, 1));
    # non-trivial values so the per-channel broadcast is exercised.
    weight = jax.random.normal(kw, (C, 1, 1), dtype=jnp.float32) + 1.0

    out = jax.block_until_ready(rescale(x, weight))
    ref = weight.reshape(1, C, 1, 1) * x
    assert out.shape == x.shape
    assert jnp.allclose(out, ref, atol=1e-6, rtol=1e-6)

    # Fallback (ragged H*W) path: H=W=7 -> H*W=49 (flattened to C*H*W).
    H2, W2 = 7, 7
    x_r = jax.random.normal(kx2, (N, C, H2, W2), dtype=jnp.float32)
    out_r = jax.block_until_ready(rescale(x_r, weight))
    ref_r = weight.reshape(1, C, 1, 1) * x_r
    assert out_r.shape == x_r.shape
    assert jnp.allclose(out_r, ref_r, atol=1e-6, rtol=1e-6)

    print("KERNEL_OK")
</pallas_src>

<mosaic_0001>
module attributes {stable_mosaic.version = 11 : i64} {
  func.func @_rescale_kernel_3d(%arg0: i32, %arg1: i32, %arg2: i32, %arg3: memref<4x1xf32, #tpu.memory_space<vmem>>, %arg4: memref<2x4x256xf32, #tpu.memory_space<vmem>>, %arg5: memref<2x4x256xf32, #tpu.memory_space<vmem>>) attributes {dimension_semantics = [#tpu.dimension_semantics<parallel>, #tpu.dimension_semantics<parallel>, #tpu.dimension_semantics<parallel>], iteration_bounds = array<i64: 1, 1, 1>, scalar_prefetch = 0 : i64, scratch_operands = 0 : i64, tpu.core_type = #tpu.core_type<tc>, window_params = [{transform_indices = @transform_0, window_bounds = array<i64: 4, 1>}, {transform_indices = @transform_1, window_bounds = array<i64: 2, 4, 256>}, {transform_indices = @transform_2, window_bounds = array<i64: 2, 4, 256>}]} {
    %c0 = arith.constant 0 : index
    %c0_0 = arith.constant 0 : index
    %c0_1 = arith.constant 0 : index
    %0 = vector.load %arg4[%c0, %c0_0, %c0_1] : memref<2x4x256xf32, #tpu.memory_space<vmem>>, vector<2x4x256xf32>
    %c0_2 = arith.constant 0 : index
    %c0_3 = arith.constant 0 : index
    %1 = vector.load %arg3[%c0_2, %c0_3] : memref<4x1xf32, #tpu.memory_space<vmem>>, vector<4x1xf32>
    %2 = vector.shape_cast %1 : vector<4x1xf32> to vector<1x4x1xf32>
    %3 = vector.broadcast %2 : vector<1x4x1xf32> to vector<2x4x256xf32>
    %4 = arith.mulf %0, %3 : vector<2x4x256xf32>
    %c0_4 = arith.constant 0 : index
    %c0_5 = arith.constant 0 : index
    %c0_6 = arith.constant 0 : index
    %5 = vector.load %arg5[%c0_4, %c0_5, %c0_6] : memref<2x4x256xf32, #tpu.memory_space<vmem>>, vector<2x4x256xf32>
    tpu.vector_store %arg5[%c0_4, %c0_5, %c0_6], %4 {strides = array<i32>} : memref<2x4x256xf32, #tpu.memory_space<vmem>>, vector<2x4x256xf32>,
    return
  }
  func.func @transform_0(%arg0: i32, %arg1: i32, %arg2: i32) -> (i32, i32) {
    %c0_i32 = arith.constant 0 : i32
    %c0_i32_0 = arith.constant 0 : i32
    return %arg1, %c0_i32 : i32, i32
  }
  func.func @transform_1(%arg0: i32, %arg1: i32, %arg2: i32) -> (i32, i32, i32) {
    %c0_i32 = arith.constant 0 : i32
    return %arg0, %arg1, %arg2 : i32, i32, i32
  }
  func.func @transform_2(%arg0: i32, %arg1: i32, %arg2: i32) -> (i32, i32, i32) {
    %c0_i32 = arith.constant 0 : i32
    return %arg0, %arg1, %arg2 : i32, i32, i32
  }
}

</mosaic_0001>

<bundles_post_ra>
// kernel: tpu_custom_call.1
= control target key start
LH: loop header
LB: loop body
LE: loop exit
PB: predicated region body
PF: predicated region fallthrough
CT: control target
= control target key end

     0   :  { %7 = vsyncpa [#allocation3], 0  ;;  %s171_s0 = inlined_call_operand.vmem [shape: f32[4,1], index: 0, kind: input, shape index: {}]   ;;  %s172_s1 = inlined_call_operand.hbm [shape: f32[2,4,256], index: 1, kind: input, shape index: {}]   ;;  %s173_s2 = inlined_call_operand.hbm [shape: f32[2,4,256], index: 2, kind: output, shape index: {}]  }
   0x1   :  { %8 = vsyncpa [#allocation4], 0  ;;  %s117_s9 = smov [#allocation2]   ;;  %s69_s13 = scalar_lea.hbm %s172_s1, 256 }
   0x2   :  { %s16_s10 = sshll.u32 %s117_s9, 4  ;;  %p70_p0 = scmp.ne.s32.totalorder %s172_s1, %s69_s13  ;;  %s17_s10 = int_to_ptr.vmem [resolvable:$true] %s16_s10 }
   0x3   :  { %p73_p1 = scmp.lt.u32.totalorder %s69_s13, %s172_s1 }
   0x5   :  { %p75_p2 = pnand %p73_p1, %p70_p0 }
   0x7   :  { %78 = shalt.err (!%p75_p2)
}
   0x8   :  { %s79_s18 = scalar_lea.vmem %s17_s10, 256  ;;  %p84_p4 = scmp.lt.s32.totalorder %s17_s10, %s17_s10 }
   0x9   :  { %p80_p3 = scmp.ne.s32.totalorder %s17_s10, %s79_s18  ;;  %p85_p5 = scmp.lt.s32.totalorder %s79_s18, %s79_s18 }
   0xb   :  { %p86_p6 = por %p85_p5, %p84_p4 }
   0xd   :  { %p87_p7 = pnand %p86_p6, %p80_p3 }
   0xf   :  { %90 = shalt.err (!%p87_p7)
}
  0x10   :  { %s118_s19 = smov 128   ;;  %s119_s20 = smov 8  }
  0x11   :  { %22 = dma.hbm_to_vmem [thread:$0]  %s172_s1, 256, %s17_s10, [#allocation3], %s118_s19, %s118_s19, %s119_s20  }
  0x12   :  { %113 = dma.done.wait [#allocation3], 256  }
  0x13   :  { %114 = vsyncadd [#allocation3], 4294967040  ;;  %v120_v0 = vmov 0   ;;  %v28_v1 = vld [vmem:[%s171_s0] sm:$0xf]  ;;  %v36_v4 = vlaneseq  ;;  %v27_v10 = vld [vmem:[#allocation2 + $0x8] sm:$0xff] }
  0x14   :  { %68 = vset.pattern.permute.xlu0 %v120_v0  ;;  %v121_v2 = vmov 839922192   ;;  %v26_v9 = vld [vmem:[#allocation2] sm:$0xff]  ;;  %s122_s25 = smov [#allocation5]  }
  0x15   :  { %31 = vperm.xlu0 %68, %v28_v1   ;;  %v34_v3 = vunpack.c.l.s4 %v121_v2  ;;  %v37_v6 = vshrl.u32 %v36_v4, 7  ;;  %s50_s1 = sshll.u32 %s122_s25, 4  ;;  %s51_s1 = int_to_ptr.vmem [resolvable:$true] %s50_s1 }
  0x16   :  { %s91_s26 = scalar_lea.vmem %s51_s1, 256  ;;  %p96_p9 = scmp.lt.s32.totalorder %s51_s1, %s51_s1 }
  0x17   :  { %v35_v5 = vunpack.c.0.s8 %v34_v3  ;;  %p92_p8 = scmp.ne.s32.totalorder %s51_s1, %s91_s26  ;;  %p97_p10 = scmp.lt.s32.totalorder %s91_s26, %s91_s26 }
  0x19   :  { %v38_v7 = vsub.s32 %v35_v5, %v37_v6  ;;  %p98_p11 = por %p97_p10, %p96_p9 }
  0x1b   :  { %p99_p12 = pnand %p98_p11, %p92_p8 }
  0x94   :  { %v32_v8 = vpop.permute.xlu0 %31 }
  0x95   :  { %v39_v11 = vrot.slane %v32_v8, %v38_v7 }
  0x97   :  { %v41_v12 = vmul.f32 %v39_v11, %v26_v9  ;;  %v42_v13 = vmul.f32 %v39_v11, %v27_v10 }
  0x99   :  { %43 = vst [vmem:[#allocation5] sm:$0xff] %v41_v12  ;;  %44 = vst [vmem:[#allocation5 + $0x8] sm:$0xff] %v42_v13 }
  0x9a   :  { %102 = shalt.err (!%p99_p12)
}
  0x9b   :  { %s103_s28 = scalar_lea.hbm %s173_s2, 256 }
  0x9c   :  { %p104_p13 = scmp.ne.s32.totalorder %s173_s2, %s103_s28  ;;  %p107_p0 = scmp.lt.u32.totalorder %s103_s28, %s173_s2 }
  0x9e   :  { %p109_p1 = pnand %p107_p0, %p104_p13 }
  0xa0   :  { %112 = shalt.err (!%p109_p1)
}
  0xa1   :  { %56 = dma.vmem_to_hbm [thread:$0]  %s51_s1, 256, %s173_s2, [#allocation4], %s118_s19, %s118_s19, %s119_s20  }
  0xa2   :  { %115 = dma.done.wait [#allocation4], 256  }
  0xa3   :  { %116 = vsyncadd [#allocation4], 4294967040 }
  0xa4   :  { %60 = vsyncpa [#allocation3], 1 }
  0xa5   :  { %61 = vsyncpa [#allocation4], 1 }

</bundles_post_ra>
